<compile_context>
chip_gen: v5e
topology: v5e:2x2
jax: 0.10.0
libtpu: 0.0.40
codegen_flags: <defaults>
</compile_context>

<pallas_src>
import functools

import jax
import jax.numpy as jnp
from jax.experimental import pallas as pl
from jax.experimental.pallas import tpu as pltpu

BN_EPS = 1e-5
LANE = 128


def _bn_relu(h, gamma, beta):
    # h: (B, F); gamma/beta: (1, F). Training-mode batch-norm + ReLU, folded to a
    # single multiply-add on the (B, F) tensor.
    mean = jnp.mean(h, axis=0, keepdims=True)
    m2 = jnp.mean(h * h, axis=0, keepdims=True)
    var = jnp.maximum(m2 - mean * mean, 0.0)        # biased variance, one pass over h
    scale = gamma * jax.lax.rsqrt(var + BN_EPS)     # (1,F) row op; rsqrt -> EUP
    shift = beta - mean * scale                     # (1,F) row op
    return jnp.maximum(h * scale + shift, 0.0)      # one (B,F) mul + add + max


def mlp_kernel(x_ref, w1_ref, wstack_ref, rows_ref, out_ref):
    # rows_ref rows: 0=g1 1=be1 2=g2 3=be2 4=g3 5=be3 6=b4 7=zeros (pad)
    # fc1 -> bn1 -> relu   (fc biases before training-mode BN cancel -> omitted)
    h = jnp.dot(x_ref[...], w1_ref[...], preferred_element_type=jnp.float32)
    h = _bn_relu(h, rows_ref[0:1, :], rows_ref[1:2, :])

    # fc2 -> bn2 -> relu
    h = jnp.dot(h, wstack_ref[0], preferred_element_type=jnp.float32)
    h = _bn_relu(h, rows_ref[2:3, :], rows_ref[3:4, :])

    # fc3 -> bn3 -> relu
    h = jnp.dot(h, wstack_ref[1], preferred_element_type=jnp.float32)
    h = _bn_relu(h, rows_ref[4:5, :], rows_ref[5:6, :])

    # fc4 (logits, no activation) — lane-dense padded output
    out_ref[...] = (
        jnp.dot(h, wstack_ref[2], preferred_element_type=jnp.float32)
        + rows_ref[6:7, :]
    )


def _pad2(a, rows, cols):
    r, c = a.shape
    return jnp.pad(a, ((0, rows - r), (0, cols - c)))


def prepare_params(params):
    """One-time parameter prep, hoisted out of the per-call forward path.

    Pads every feature axis to a lane-dense 128, stacks w2/w3/w4 into one
    (3,128,128) input and packs the seven (1,128) row vectors into one (8,128)
    input. Padded gamma columns are zero, so padded lanes stay zero through
    BN(eps)/ReLU/matmul; the wrapper slices the logits back to num_classes.
    """
    d_in = params["w1"].shape[0]
    num_classes = params["w4"].shape[1]
    assert num_classes <= LANE, "kernel assumes num_classes <= 128"
    d_in_pad = max(LANE, pl.cdiv(d_in, LANE) * LANE)

    w1 = _pad2(params["w1"], d_in_pad, LANE)                 # (d_in,128) -> (d_in_pad,128)
    w_stack = jnp.stack([
        _pad2(params["w2"], LANE, LANE),                     # (128,64) -> (128,128)
        _pad2(params["w3"], LANE, LANE),                     # (64,32)  -> (128,128)
        _pad2(params["w4"], LANE, LANE),                     # (32,C)   -> (128,128)
    ])
    rows = jnp.concatenate([
        _pad2(params["g1"], 1, LANE), _pad2(params["be1"], 1, LANE),
        _pad2(params["g2"], 1, LANE), _pad2(params["be2"], 1, LANE),
        _pad2(params["g3"], 1, LANE), _pad2(params["be3"], 1, LANE),
        _pad2(params["b4"], 1, LANE),
        jnp.zeros((1, LANE), jnp.float32),                   # pad to full (8,128) vreg
    ], axis=0)
    return {"w1": w1, "w_stack": w_stack, "rows": rows,
            "d_in": d_in, "num_classes": num_classes}


@functools.partial(jax.jit, static_argnames=("num_classes",))
def _forward_padded(x, w1, w_stack, rows, *, num_classes):
    b = x.shape[0]
    # Only per-call prep: pad the activation to the lane-dense width of w1's K dim.
    x_pad = jnp.pad(x, ((0, 0), (0, w1.shape[0] - x.shape[1])))

    vmem = pl.BlockSpec(memory_space=pltpu.MemorySpace.VMEM)
    flops = 2 * b * (w1.shape[0] * LANE + 3 * LANE * LANE)
    bytes_accessed = 4 * (x_pad.size + w1.size + w_stack.size + rows.size + b * LANE)

    out = pl.pallas_call(
        mlp_kernel,
        out_shape=jax.ShapeDtypeStruct((b, LANE), jnp.float32),
        in_specs=[vmem, vmem, vmem, vmem],
        out_specs=vmem,
        cost_estimate=pl.CostEstimate(
            flops=flops,
            transcendentals=3 * LANE,            # one rsqrt per BN feature
            bytes_accessed=bytes_accessed,
        ),
        # Real footprint is < 1 MiB; 8 MiB documents the budget with headroom
        # (also comfortably inside v7x's 64 MiB physical VMEM).
        compiler_params=pltpu.CompilerParams(vmem_limit_bytes=8 * 1024 * 1024),
    )(x_pad, w1, w_stack, rows)

    return out[:, :num_classes]


def mlp_classifier_forward(x, prepared):
    """x: (B, input_size) f32. prepared: dict from prepare_params (one-time)."""
    return _forward_padded(x, prepared["w1"], prepared["w_stack"], prepared["rows"],
                           num_classes=prepared["num_classes"])


def init_params(key, input_size, num_classes):
    """PyTorch-equivalent shapes: Linear weight stored as (in, out), bias (1, out)."""
    dims = [(input_size, 128), (128, 64), (64, 32), (32, num_classes)]
    params = {}
    keys = jax.random.split(key, len(dims) * 2)
    for i, (din, dout) in enumerate(dims, start=1):
        kw, kb = keys[2 * (i - 1)], keys[2 * (i - 1) + 1]
        scale = 1.0 / jnp.sqrt(jnp.float32(din))
        params[f"w{i}"] = jax.random.uniform(kw, (din, dout), jnp.float32, -scale, scale)
        params[f"b{i}"] = jax.random.uniform(kb, (1, dout), jnp.float32, -scale, scale)
        if i <= 3:  # BatchNorm1d affine params (gamma=1, beta=0 at init)
            params[f"g{i}"] = jnp.ones((1, dout), jnp.float32)
            params[f"be{i}"] = jnp.zeros((1, dout), jnp.float32)
    return params


def reference_forward(x, params):
    """Pure-JAX PyTorch-semantics reference (keeps pre-BN biases, two-pass variance)."""
    h = x
    for i in (1, 2, 3):
        h = h @ params[f"w{i}"] + params[f"b{i}"]
        mean = jnp.mean(h, axis=0, keepdims=True)
        var = jnp.mean((h - mean) ** 2, axis=0, keepdims=True)
        h = (h - mean) / jnp.sqrt(var + BN_EPS)
        h = jnp.maximum(h * params[f"g{i}"] + params[f"be{i}"], 0.0)
    return h @ params["w4"] + params["b4"]


if __name__ == "__main__":
    key = jax.random.PRNGKey(0)
    k_x, k_p = jax.random.split(key)

    batch = 8
    input_size = 16    # train_features.shape[1] (synthetic)
    num_classes = 2    # binary labels -> len(unique) == 2

    x = jax.random.normal(k_x, (batch, input_size), jnp.float32)
    params = init_params(k_p, input_size, num_classes)

    prepared = prepare_params(params)      # one-time prep, hoisted out of the hot path
    out = mlp_classifier_forward(x, prepared)
    out = jax.block_until_ready(out)

    ref = reference_forward(x, params)
    assert out.shape == (batch, num_classes)
    # tolerance covers tiny FP deviations from the single-pass variance / affine-fold rewrite
    assert jnp.allclose(out, ref, atol=1e-3, rtol=1e-3), "mismatch vs reference"

    print("KERNEL_OK")
</pallas_src>

<mosaic_0001>
module attributes {stable_mosaic.version = 11 : i64} {
  func.func @mlp_kernel(%arg0: memref<8x128xf32, #tpu.memory_space<vmem>>, %arg1: memref<128x128xf32, #tpu.memory_space<vmem>>, %arg2: memref<3x128x128xf32, #tpu.memory_space<vmem>>, %arg3: memref<8x128xf32, #tpu.memory_space<vmem>>, %arg4: memref<8x128xf32, #tpu.memory_space<vmem>>) attributes {dimension_semantics = [], scalar_prefetch = 0 : i64, scratch_operands = 0 : i64, tpu.core_type = #tpu.core_type<tc>} {
    %c0 = arith.constant 0 : index
    %c0_0 = arith.constant 0 : index
    %0 = vector.load %arg0[%c0, %c0_0] : memref<8x128xf32, #tpu.memory_space<vmem>>, vector<8x128xf32>
    %c0_1 = arith.constant 0 : index
    %c0_2 = arith.constant 0 : index
    %1 = vector.load %arg1[%c0_1, %c0_2] : memref<128x128xf32, #tpu.memory_space<vmem>>, vector<128x128xf32>
    %cst = arith.constant dense<0.000000e+00> : vector<8x128xf32>
    %2 = tpu.matmul %0, %1, %cst {dimension_numbers = #tpu.dot_dimension_numbers<[1], [0], [0], [1], [0, 0, 1, 1], [], []>} : vector<8x128xf32>, vector<128x128xf32>, vector<8x128xf32> -> vector<8x128xf32>
    %c0_3 = arith.constant 0 : index
    %c0_4 = arith.constant 0 : index
    %3 = vector.load %arg3[%c0_3, %c0_4] : memref<8x128xf32, #tpu.memory_space<vmem>>, vector<1x128xf32>
    %c1 = arith.constant 1 : index
    %c0_5 = arith.constant 0 : index
    %4 = vector.load %arg3[%c1, %c0_5] : memref<8x128xf32, #tpu.memory_space<vmem>>, vector<1x128xf32>
    %cst_6 = arith.constant dense<0.000000e+00> : vector<128xf32>
    %5 = vector.multi_reduction <add>, %2, %cst_6 [0] : vector<8x128xf32> to vector<128xf32>
    %6 = vector.shape_cast %5 : vector<128xf32> to vector<1x128xf32>
    %cst_7 = arith.constant 8.000000e+00 : f32
    %7 = vector.broadcast %cst_7 : f32 to vector<1x128xf32>
    %8 = arith.divf %6, %7 : vector<1x128xf32>
    %9 = arith.mulf %2, %2 : vector<8x128xf32>
    %cst_8 = arith.constant dense<0.000000e+00> : vector<128xf32>
    %10 = vector.multi_reduction <add>, %9, %cst_8 [0] : vector<8x128xf32> to vector<128xf32>
    %11 = vector.shape_cast %10 : vector<128xf32> to vector<1x128xf32>
    %cst_9 = arith.constant 8.000000e+00 : f32
    %12 = vector.broadcast %cst_9 : f32 to vector<1x128xf32>
    %13 = arith.divf %11, %12 : vector<1x128xf32>
    %14 = arith.mulf %8, %8 : vector<1x128xf32>
    %15 = arith.subf %13, %14 : vector<1x128xf32>
    %cst_10 = arith.constant 0.000000e+00 : f32
    %16 = vector.broadcast %cst_10 : f32 to vector<1x128xf32>
    %17 = arith.maximumf %15, %16 : vector<1x128xf32>
    %cst_11 = arith.constant 9.99999974E-6 : f32
    %18 = vector.broadcast %cst_11 : f32 to vector<1x128xf32>
    %19 = arith.addf %17, %18 : vector<1x128xf32>
    %20 = math.rsqrt %19 : vector<1x128xf32>
    %21 = arith.mulf %3, %20 : vector<1x128xf32>
    %22 = arith.mulf %8, %21 : vector<1x128xf32>
    %23 = arith.subf %4, %22 : vector<1x128xf32>
    %24 = vector.broadcast %21 : vector<1x128xf32> to vector<8x128xf32>
    %25 = arith.mulf %2, %24 : vector<8x128xf32>
    %26 = vector.broadcast %23 : vector<1x128xf32> to vector<8x128xf32>
    %27 = arith.addf %25, %26 : vector<8x128xf32>
    %cst_12 = arith.constant 0.000000e+00 : f32
    %28 = vector.broadcast %cst_12 : f32 to vector<8x128xf32>
    %29 = arith.maximumf %27, %28 : vector<8x128xf32>
    %c0_13 = arith.constant 0 : index
    %c0_14 = arith.constant 0 : index
    %c0_15 = arith.constant 0 : index
    %30 = vector.load %arg2[%c0_13, %c0_14, %c0_15] : memref<3x128x128xf32, #tpu.memory_space<vmem>>, vector<1x128x128xf32>
    %31 = vector.shape_cast %30 : vector<1x128x128xf32> to vector<128x128xf32>
    %cst_16 = arith.constant dense<0.000000e+00> : vector<8x128xf32>
    %32 = tpu.matmul %29, %31, %cst_16 {dimension_numbers = #tpu.dot_dimension_numbers<[1], [0], [0], [1], [0, 0, 1, 1], [], []>} : vector<8x128xf32>, vector<128x128xf32>, vector<8x128xf32> -> vector<8x128xf32>
    %c2 = arith.constant 2 : index
    %c0_17 = arith.constant 0 : index
    %33 = vector.load %arg3[%c2, %c0_17] : memref<8x128xf32, #tpu.memory_space<vmem>>, vector<1x128xf32>
    %c3 = arith.constant 3 : index
    %c0_18 = arith.constant 0 : index
    %34 = vector.load %arg3[%c3, %c0_18] : memref<8x128xf32, #tpu.memory_space<vmem>>, vector<1x128xf32>
    %cst_19 = arith.constant dense<0.000000e+00> : vector<128xf32>
    %35 = vector.multi_reduction <add>, %32, %cst_19 [0] : vector<8x128xf32> to vector<128xf32>
    %36 = vector.shape_cast %35 : vector<128xf32> to vector<1x128xf32>
    %cst_20 = arith.constant 8.000000e+00 : f32
    %37 = vector.broadcast %cst_20 : f32 to vector<1x128xf32>
    %38 = arith.divf %36, %37 : vector<1x128xf32>
    %39 = arith.mulf %32, %32 : vector<8x128xf32>
    %cst_21 = arith.constant dense<0.000000e+00> : vector<128xf32>
    %40 = vector.multi_reduction <add>, %39, %cst_21 [0] : vector<8x128xf32> to vector<128xf32>
    %41 = vector.shape_cast %40 : vector<128xf32> to vector<1x128xf32>
    %cst_22 = arith.constant 8.000000e+00 : f32
    %42 = vector.broadcast %cst_22 : f32 to vector<1x128xf32>
    %43 = arith.divf %41, %42 : vector<1x128xf32>
    %44 = arith.mulf %38, %38 : vector<1x128xf32>
    %45 = arith.subf %43, %44 : vector<1x128xf32>
    %cst_23 = arith.constant 0.000000e+00 : f32
    %46 = vector.broadcast %cst_23 : f32 to vector<1x128xf32>
    %47 = arith.maximumf %45, %46 : vector<1x128xf32>
    %cst_24 = arith.constant 9.99999974E-6 : f32
    %48 = vector.broadcast %cst_24 : f32 to vector<1x128xf32>
    %49 = arith.addf %47, %48 : vector<1x128xf32>
    %50 = math.rsqrt %49 : vector<1x128xf32>
    %51 = arith.mulf %33, %50 : vector<1x128xf32>
    %52 = arith.mulf %38, %51 : vector<1x128xf32>
    %53 = arith.subf %34, %52 : vector<1x128xf32>
    %54 = vector.broadcast %51 : vector<1x128xf32> to vector<8x128xf32>
    %55 = arith.mulf %32, %54 : vector<8x128xf32>
    %56 = vector.broadcast %53 : vector<1x128xf32> to vector<8x128xf32>
    %57 = arith.addf %55, %56 : vector<8x128xf32>
    %cst_25 = arith.constant 0.000000e+00 : f32
    %58 = vector.broadcast %cst_25 : f32 to vector<8x128xf32>
    %59 = arith.maximumf %57, %58 : vector<8x128xf32>
    %c1_26 = arith.constant 1 : index
    %c0_27 = arith.constant 0 : index
    %c0_28 = arith.constant 0 : index
    %60 = vector.load %arg2[%c1_26, %c0_27, %c0_28] : memref<3x128x128xf32, #tpu.memory_space<vmem>>, vector<1x128x128xf32>
    %61 = vector.shape_cast %60 : vector<1x128x128xf32> to vector<128x128xf32>
    %cst_29 = arith.constant dense<0.000000e+00> : vector<8x128xf32>
    %62 = tpu.matmul %59, %61, %cst_29 {dimension_numbers = #tpu.dot_dimension_numbers<[1], [0], [0], [1], [0, 0, 1, 1], [], []>} : vector<8x128xf32>, vector<128x128xf32>, vector<8x128xf32> -> vector<8x128xf32>
    %c4 = arith.constant 4 : index
    %c0_30 = arith.constant 0 : index
    %63 = vector.load %arg3[%c4, %c0_30] : memref<8x128xf32, #tpu.memory_space<vmem>>, vector<1x128xf32>
    %c5 = arith.constant 5 : index
    %c0_31 = arith.constant 0 : index
    %64 = vector.load %arg3[%c5, %c0_31] : memref<8x128xf32, #tpu.memory_space<vmem>>, vector<1x128xf32>
    %cst_32 = arith.constant dense<0.000000e+00> : vector<128xf32>
    %65 = vector.multi_reduction <add>, %62, %cst_32 [0] : vector<8x128xf32> to vector<128xf32>
    %66 = vector.shape_cast %65 : vector<128xf32> to vector<1x128xf32>
    %cst_33 = arith.constant 8.000000e+00 : f32
    %67 = vector.broadcast %cst_33 : f32 to vector<1x128xf32>
    %68 = arith.divf %66, %67 : vector<1x128xf32>
    %69 = arith.mulf %62, %62 : vector<8x128xf32>
    %cst_34 = arith.constant dense<0.000000e+00> : vector<128xf32>
    %70 = vector.multi_reduction <add>, %69, %cst_34 [0] : vector<8x128xf32> to vector<128xf32>
    %71 = vector.shape_cast %70 : vector<128xf32> to vector<1x128xf32>
    %cst_35 = arith.constant 8.000000e+00 : f32
    %72 = vector.broadcast %cst_35 : f32 to vector<1x128xf32>
    %73 = arith.divf %71, %72 : vector<1x128xf32>
    %74 = arith.mulf %68, %68 : vector<1x128xf32>
    %75 = arith.subf %73, %74 : vector<1x128xf32>
    %cst_36 = arith.constant 0.000000e+00 : f32
    %76 = vector.broadcast %cst_36 : f32 to vector<1x128xf32>
    %77 = arith.maximumf %75, %76 : vector<1x128xf32>
    %cst_37 = arith.constant 9.99999974E-6 : f32
    %78 = vector.broadcast %cst_37 : f32 to vector<1x128xf32>
    %79 = arith.addf %77, %78 : vector<1x128xf32>
    %80 = math.rsqrt %79 : vector<1x128xf32>
    %81 = arith.mulf %63, %80 : vector<1x128xf32>
    %82 = arith.mulf %68, %81 : vector<1x128xf32>
    %83 = arith.subf %64, %82 : vector<1x128xf32>
    %84 = vector.broadcast %81 : vector<1x128xf32> to vector<8x128xf32>
    %85 = arith.mulf %62, %84 : vector<8x128xf32>
    %86 = vector.broadcast %83 : vector<1x128xf32> to vector<8x128xf32>
    %87 = arith.addf %85, %86 : vector<8x128xf32>
    %cst_38 = arith.constant 0.000000e+00 : f32
    %88 = vector.broadcast %cst_38 : f32 to vector<8x128xf32>
    %89 = arith.maximumf %87, %88 : vector<8x128xf32>
    %c2_39 = arith.constant 2 : index
    %c0_40 = arith.constant 0 : index
    %c0_41 = arith.constant 0 : index
    %90 = vector.load %arg2[%c2_39, %c0_40, %c0_41] : memref<3x128x128xf32, #tpu.memory_space<vmem>>, vector<1x128x128xf32>
    %91 = vector.shape_cast %90 : vector<1x128x128xf32> to vector<128x128xf32>
    %cst_42 = arith.constant dense<0.000000e+00> : vector<8x128xf32>
    %92 = tpu.matmul %89, %91, %cst_42 {dimension_numbers = #tpu.dot_dimension_numbers<[1], [0], [0], [1], [0, 0, 1, 1], [], []>} : vector<8x128xf32>, vector<128x128xf32>, vector<8x128xf32> -> vector<8x128xf32>
    %c6 = arith.constant 6 : index
    %c0_43 = arith.constant 0 : index
    %93 = vector.load %arg3[%c6, %c0_43] : memref<8x128xf32, #tpu.memory_space<vmem>>, vector<1x128xf32>
    %94 = vector.broadcast %93 : vector<1x128xf32> to vector<8x128xf32>
    %95 = arith.addf %92, %94 : vector<8x128xf32>
    %c0_44 = arith.constant 0 : index
    %c0_45 = arith.constant 0 : index
    %96 = vector.load %arg4[%c0_44, %c0_45] : memref<8x128xf32, #tpu.memory_space<vmem>>, vector<8x128xf32>
    tpu.vector_store %arg4[%c0_44, %c0_45], %95 {strides = array<i32>} : memref<8x128xf32, #tpu.memory_space<vmem>>, vector<8x128xf32>,
    return
  }
}

</mosaic_0001>

<bundles_post_ra>
// kernel: _forward_padded.1
= control target key start
LH: loop header
LB: loop body
LE: loop exit
PB: predicated region body
PF: predicated region fallthrough
CT: control target
= control target key end

     0   :  { %9 = vsyncpa [#allocation3], 0  ;;  %s466_s0 = inlined_call_operand.vmem [shape: f32[8,128], index: 0, kind: input, shape index: {}]   ;;  %s467_s1 = inlined_call_operand.hbm [shape: f32[128,128], index: 1, kind: input, shape index: {}]   ;;  %s468_s2 = inlined_call_operand.hbm [shape: f32[3,128,128], index: 2, kind: input, shape index: {}]   ;;  %s469_s3 = inlined_call_operand.vmem [shape: f32[8,128], index: 3, kind: input, shape index: {}]   ;;  %s470_s4 = inlined_call_operand.vmem [shape: f32[8,128], index: 4, kind: output, shape index: {}]  }
   0x1   :  { %s17_s17 = sshll.u32 %s467_s1, 4  ;;  %s18_s17 = int_to_ptr.hbm [resolvable:$true] %s17_s17 }
   0x2   :  { %10 = vsyncpa [#allocation5], 0  ;;  %s395_s18 = smov [#allocation2]   ;;  %s30_s22 = sshll.u32 %s468_s2, 4  ;;  %s31_s22 = int_to_ptr.hbm [resolvable:$true] %s30_s22 }
   0x3   :  { %s19_s19 = sshll.u32 %s395_s18, 4  ;;  %s396_s23 = smov 128   ;;  %s20_s19 = int_to_ptr.vmem [resolvable:$true] %s19_s19 }
   0x4   :  { %s397_s24 = smov 8   ;;  %s398_s25 = smov [#allocation4]  }
   0x5   :  { %25 = dma.hbm_to_vmem [thread:$0]  %s18_s17, 2048, %s20_s19, [#allocation3], %s396_s23, %s396_s23, %s397_s24  }
   0x6   :  { %s32_s26 = sshll.u32 %s398_s25, 4  ;;  %s33_s26 = int_to_ptr.vmem [resolvable:$true] %s32_s26 }
   0x7   :  { %38 = dma.hbm_to_vmem [thread:$0]  %s31_s22, 6144, %s33_s26, [#allocation5], %s396_s23, %s396_s23, %s397_s24  }
   0x8   :  { %391 = dma.done.wait [#allocation3], 2048  }
   0x9   :  { %392 = vsyncadd [#allocation3], 4294965248 }
   0xa   :  { %393 = dma.done.wait [#allocation5], 6144  }
   0xb   :  { %394 = vsyncadd [#allocation5], 4294961152  ;;  %v65_v0 = vld [vmem:[#allocation2 + $0x78] sm:$0xff]  ;;  %v64_v1 = vld [vmem:[#allocation2 + $0x70] sm:$0xff]  ;;  %v399_v17 = vmov 8.0  }
   0xc   :  { %66 = vmatpush.msra.mxu0 %v65_v0  ;;  %v63_v2 = vld [vmem:[#allocation2 + $0x68] sm:$0xff]  ;;  %v62_v3 = vld [vmem:[#allocation2 + $0x60] sm:$0xff]  ;;  %v61_v4 = vld [vmem:[#allocation2 + $0x58] sm:$0xff]  ;;  %335 = vrcp.f32 %v399_v17 }
   0xd   :  { %v60_v5 = vld [vmem:[#allocation2 + $0x50] sm:$0xff]  ;;  %v59_v6 = vld [vmem:[#allocation2 + $0x48] sm:$0xff]  ;;  %v58_v7 = vld [vmem:[#allocation2 + $0x40] sm:$0xff] }
   0xe   :  { %67 = vmatpush.msra.mxu0 %v64_v1  ;;  %v57_v8 = vld [vmem:[#allocation2 + $0x38] sm:$0xff]  ;;  %v56_v9 = vld [vmem:[#allocation2 + $0x30] sm:$0xff]  ;;  %v55_v10 = vld [vmem:[#allocation2 + $0x28] sm:$0xff] }
   0xf   :  { %v54_v11 = vld [vmem:[#allocation2 + $0x20] sm:$0xff]  ;;  %v53_v12 = vld [vmem:[#allocation2 + $0x18] sm:$0xff]  ;;  %v52_v13 = vld [vmem:[#allocation2 + $0x10] sm:$0xff] }
  0x10   :  { %68 = vmatpush.msra.mxu0 %v63_v2  ;;  %v51_v14 = vld [vmem:[#allocation2 + $0x8] sm:$0xff]  ;;  %v50_v15 = vld [vmem:[#allocation2] sm:$0xff]  ;;  %v147_v18 = vld [vmem:[#allocation4 + $0x78] sm:$0xff] }
  0x11   :  { %v49_v16 = vld [vmem:[%s466_s0] sm:$0xff]  ;;  %148 = vmatpush.msra.mxu1 %v147_v18  ;;  %v146_v20 = vld [vmem:[#allocation4 + $0x70] sm:$0xff]  ;;  %v145_v21 = vld [vmem:[#allocation4 + $0x68] sm:$0xff] }
  0x12   :  { %69 = vmatpush.msra.mxu0 %v62_v3  ;;  %v336_v19 = vpop.eup %335  ;;  %v144_v23 = vld [vmem:[#allocation4 + $0x60] sm:$0xff]  ;;  %v143_v24 = vld [vmem:[#allocation4 + $0x58] sm:$0xff]  ;;  %v142_v26 = vld [vmem:[#allocation4 + $0x50] sm:$0xff] }
  0x13   :  { %149 = vmatpush.msra.mxu1 %v146_v20  ;;  %v95_v22 = vmul.f32 8.0, %v336_v19  ;;  %v141_v30 = vld [vmem:[#allocation4 + $0x48] sm:$0xff]  ;;  %v140_v34 = vld [vmem:[#allocation4 + $0x40] sm:$0xff]  ;;  %v139_v37 = vld [vmem:[#allocation4 + $0x38] sm:$0xff]  ;;  %vm99_vm0 = vweird.f32 %v336_v19 }
  0x14   :  { %70 = vmatpush.msra.mxu0 %v61_v4  ;;  %v138_v41 = vld [vmem:[#allocation4 + $0x30] sm:$0xff]  ;;  %v137_v44 = vld [vmem:[#allocation4 + $0x28] sm:$0xff]  ;;  %v136_v48 = vld [vmem:[#allocation4 + $0x20] sm:$0xff] }
  0x15   :  { %150 = vmatpush.msra.mxu1 %v145_v21  ;;  %v96_v25 = vsub.f32 1.0, %v95_v22  ;;  %v135_v51 = vld [vmem:[#allocation4 + $0x18] sm:$0xff]  ;;  %v134_v52 = vld [vmem:[#allocation4 + $0x10] sm:$0xff]  ;;  %v133_v55 = vld [vmem:[#allocation4 + $0x8] sm:$0xff] }
  0x16   :  { %71 = vmatpush.msra.mxu0 %v60_v5  ;;  %v132_v57 = vld [vmem:[#allocation4] sm:$0xff]  ;;  %v219_v17 = vld [vmem:[#allocation4 + $0xd8] sm:$0xff]  ;;  %v218_v18 = vld [vmem:[#allocation4 + $0xd0] sm:$0xff] }
  0x17   :  { %151 = vmatpush.msra.mxu1 %v144_v23  ;;  %v97_v31 = vmul.f32 %v336_v19, %v96_v25  ;;  %v86_v1 = vld [vmem:[%s469_s3] sm:$0x1]  ;;  %v87_v5 = vld [vmem:[%s469_s3 + $0x1] sm:$0x1]  ;;  %v217_v22 = vld [vmem:[#allocation4 + $0xc8] sm:$0xff] }
  0x18   :  { %72 = vmatpush.msra.mxu0 %v59_v6  ;;  %v216_v25 = vld [vmem:[#allocation4 + $0xc0] sm:$0xff] }
  0x19   :  { %152 = vmatpush.msra.mxu1 %v143_v24  ;;  %v98_v38 = vadd.f32 %v336_v19, %v97_v31  ;;  %v214_v31 = vld [vmem:[#allocation4 + $0xb0] sm:$0xff] }
  0x1a   :  { %73 = vmatpush.msra.mxu0 %v58_v7 }
  0x1b   :  { %153 = vmatpush.msra.mxu1 %v142_v26  ;;  %v434_v45 = vsel %vm99_vm0, %v336_v19, %v98_v38 }
  0x1c   :  { %74 = vmatpush.msra.mxu0 %v57_v8 }
  0x1d   :  { %154 = vmatpush.msra.mxu1 %v141_v30 }
  0x1e   :  { %75 = vmatpush.msra.mxu0 %v56_v9 }
  0x1f   :  { %155 = vmatpush.msra.mxu1 %v140_v34  ;;  %v213_v34 = vld [vmem:[#allocation4 + $0xa8] sm:$0xff] }
  0x20   :  { %76 = vmatpush.msra.mxu0 %v55_v10 }
  0x21   :  { %156 = vmatpush.msra.mxu1 %v139_v37  ;;  %v212_v37 = vld [vmem:[#allocation4 + $0xa0] sm:$0xff] }
  0x22   :  { %77 = vmatpush.msra.mxu0 %v54_v11 }
  0x23   :  { %157 = vmatpush.msra.mxu1 %v138_v41  ;;  %v210_v41 = vld [vmem:[#allocation4 + $0x90] sm:$0xff] }
  0x24   :  { %78 = vmatpush.msra.mxu0 %v53_v12 }
  0x25   :  { %158 = vmatpush.msra.mxu1 %v137_v44  ;;  %v209_v44 = vld [vmem:[#allocation4 + $0x88] sm:$0xff] }
  0x26   :  { %79 = vmatpush.msra.mxu0 %v52_v13  ;;  %v223_v13 = vld [vmem:[#allocation4 + $0xf8] sm:$0xff] }
  0x27   :  { %159 = vmatpush.msra.mxu1 %v136_v48  ;;  %224 = vmatpush.msra.mxu2 %v223_v13 }
  0x28   :  { %80 = vmatpush.msra.mxu0 %v51_v14  ;;  %v222_v14 = vld [vmem:[#allocation4 + $0xf0] sm:$0xff] }
  0x29   :  { %160 = vmatpush.msra.mxu1 %v135_v51  ;;  %225 = vmatpush.msra.mxu2 %v222_v14 }
  0x2a   :  { %81 = vmatpush.msra.mxu0 %v50_v15  ;;  %v221_v15 = vld [vmem:[#allocation4 + $0xe8] sm:$0xff] }
  0x2b   :  { %82 = vmatmul.f32.vlgmr.msra.gmra.mxu0 %v49_v16  ;;  %161 = vmatpush.msra.mxu1 %v134_v52  ;;  %v220_v16 = vld [vmem:[#allocation4 + $0xe0] sm:$0xff] }
  0x2c   :  { %226 = vmatpush.msra.mxu2 %v221_v15  ;;  %v292_v15 = vld [vmem:[#allocation4 + $0x140] sm:$0xff] }
  0x2d   :  { %162 = vmatpush.msra.mxu1 %v133_v55  ;;  %v168_v55 = vld [vmem:[%s469_s3 + $0x2] sm:$0x1] }
  0x2e   :  { %227 = vmatpush.msra.mxu2 %v220_v16 }
  0x2f   :  { %163 = vmatpush.msra.mxu1 %v132_v57 }
  0x30   :  { %228 = vmatpush.msra.mxu2 %v219_v17 }
  0x32   :  { %229 = vmatpush.msra.mxu2 %v218_v18  ;;  %v291_v18 = vld [vmem:[#allocation4 + $0x138] sm:$0xff] }
  0x34   :  { %230 = vmatpush.msra.mxu2 %v217_v22 }
  0x36   :  { %231 = vmatpush.msra.mxu2 %v216_v25 }
  0xa8   :  { %v83_v27 = vpop.f32.mrf.mxu0 }
  0xa9   :  { %v88_v28 = vrot.slane %v83_v27, 4  ;;  %v102_v29 = vmul.f32 %v83_v27, %v83_v27 }
  0xab   :  { %v89_v32 = vadd.f32 %v88_v28, %v83_v27  ;;  %v103_v33 = vrot.slane %v102_v29, 4  ;;  %v215_v28 = vld [vmem:[#allocation4 + $0xb8] sm:$0xff] }
  0xac   :  { %232 = vmatpush.msra.mxu2 %v215_v28 }
  0xad   :  { %v90_v35 = vrot.slane %v89_v32, 2  ;;  %v104_v36 = vadd.f32 %v103_v33, %v102_v29 }
  0xae   :  { %233 = vmatpush.msra.mxu2 %v214_v31  ;;  %v286_v31 = vld [vmem:[#allocation4 + $0x110] sm:$0xff] }
  0xaf   :  { %v91_v39 = vadd.f32 %v90_v35, %v89_v32  ;;  %v105_v40 = vrot.slane %v104_v36, 2 }
  0xb0   :  { %234 = vmatpush.msra.mxu2 %v213_v34  ;;  %v285_v34 = vld [vmem:[#allocation4 + $0x108] sm:$0xff] }
  0xb1   :  { %v92_v42 = vrot.slane %v91_v39, 1  ;;  %v106_v43 = vadd.f32 %v105_v40, %v104_v36  ;;  %v211_v40 = vld [vmem:[#allocation4 + $0x98] sm:$0xff] }
  0xb2   :  { %235 = vmatpush.msra.mxu2 %v212_v37 }
  0xb3   :  { %v93_v46 = vadd.f32 %v92_v42, %v91_v39  ;;  %v107_v47 = vrot.slane %v106_v43, 1 }
  0xb4   :  { %236 = vmatpush.msra.mxu2 %v211_v40 }
  0xb5   :  { %v101_v49 = vmul.f32 %v434_v45, %v93_v46  ;;  %v108_v50 = vadd.f32 %v107_v47, %v106_v43  ;;  %v208_v47 = vld [vmem:[#allocation4 + $0x80] sm:$0xff] }
  0xb6   :  { %237 = vmatpush.msra.mxu2 %v210_v41 }
  0xb7   :  { %v109_v53 = vmul.f32 %v108_v50, %v434_v45  ;;  %v110_v54 = vmul.f32 %v101_v49, %v101_v49 }
  0xb8   :  { %238 = vmatpush.msra.mxu2 %v209_v44 }
  0xb9   :  { %v111_v56 = vsub.f32 %v109_v53, %v110_v54 }
  0xba   :  { %239 = vmatpush.msra.mxu2 %v208_v47 }
  0xbb   :  { %v112_v58 = vmax.f32 %v111_v56, 0.0 }
  0xbd   :  { %v113_v59 = vadd.f32 1e-05, %v112_v58 }
  0xbf   :  { %337 = vrsqrt.f32 %v113_v59  ;;  %vm120_vm2 = vweird.f32 %v113_v59 }
  0xc5   :  { %v338_v60 = vpop.eup %337 }
  0xc6   :  { %v115_v61 = vmul.f32 %v338_v60, %v113_v59  ;;  %vm121_vm1 = vweird.f32 %v338_v60  ;;  %v169_v59 = vld [vmem:[%s469_s3 + $0x3] sm:$0x1] }
  0xc7   :  { %vm122_vm3 = vmor %vm120_vm2, %vm121_vm1 }
  0xc8   :  { %v116_v62 = vmul.f32 %v338_v60, %v115_v61 }
  0xca   :  { %v117_v63 = vmul.f32 0.5, %v116_v62 }
  0xcc   :  { %v118_v0 = vsub.f32 1.5, %v117_v63 }
  0xce   :  { %v119_v2 = vmul.f32 %v338_v60, %v118_v0 }
  0xd0   :  { %v123_v3 = vsel %vm122_vm3, %v338_v60, %v119_v2 }
  0xd1   :  { %v124_v4 = vmul.f32 %v123_v3, %v86_v1  ;;  %v299_v3 = vld [vmem:[#allocation4 + $0x178] sm:$0xff] }
  0xd2   :  { %302 = vmatpush.msra.mxu3 %v299_v3 }
  0xd3   :  { %v127_v6 = vperm.slane %v124_v4, 0  ;;  %v125_v7 = vmul.f32 %v124_v4, %v101_v49  ;;  %v298_v4 = vld [vmem:[#allocation4 + $0x170] sm:$0xff] }
  0xd4   :  { %303 = vmatpush.msra.mxu3 %v298_v4 }
  0xd5   :  { %v126_v8 = vsub.f32 %v87_v5, %v125_v7  ;;  %v128_v9 = vmul.f32 %v127_v6, %v83_v27  ;;  %v297_v5 = vld [vmem:[#allocation4 + $0x168] sm:$0xff]  ;;  %v296_v6 = vld [vmem:[#allocation4 + $0x160] sm:$0xff]  ;;  %v295_v7 = vld [vmem:[#allocation4 + $0x158] sm:$0xff] }
  0xd6   :  { %304 = vmatpush.msra.mxu3 %v297_v5 }
  0xd7   :  { %v129_v10 = vperm.slane %v126_v8, 0  ;;  %v294_v8 = vld [vmem:[#allocation4 + $0x150] sm:$0xff] }
  0xd8   :  { %305 = vmatpush.msra.mxu3 %v296_v6 }
  0xd9   :  { %v130_v11 = vadd.f32 %v129_v10, %v128_v9 }
  0xda   :  { %306 = vmatpush.msra.mxu3 %v295_v7 }
  0xdb   :  { %v131_v12 = vmax.f32 %v130_v11, 0.0 }
  0xdc   :  { %307 = vmatpush.msra.mxu3 %v294_v8 }
  0xdd   :  { %164 = vmatmul.f32.vlgmr.msra.gmra.mxu1 %v131_v12  ;;  %v293_v12 = vld [vmem:[#allocation4 + $0x148] sm:$0xff] }
  0xde   :  { %308 = vmatpush.msra.mxu3 %v293_v12 }
  0xe0   :  { %309 = vmatpush.msra.mxu3 %v292_v15 }
  0xe2   :  { %310 = vmatpush.msra.mxu3 %v291_v18 }
 0x15a   :  { %v165_v19 = vpop.f32.mrf.mxu1 }
 0x15b   :  { %v170_v20 = vrot.slane %v165_v19, 4  ;;  %v177_v21 = vmul.f32 %v165_v19, %v165_v19 }
 0x15d   :  { %v171_v23 = vadd.f32 %v170_v20, %v165_v19  ;;  %v178_v24 = vrot.slane %v177_v21, 4 }
 0x15f   :  { %v172_v26 = vrot.slane %v171_v23, 2  ;;  %v179_v27 = vadd.f32 %v178_v24, %v177_v21  ;;  %v290_v21 = vld [vmem:[#allocation4 + $0x130] sm:$0xff]  ;;  %v289_v24 = vld [vmem:[#allocation4 + $0x128] sm:$0xff] }
 0x160   :  { %311 = vmatpush.msra.mxu3 %v290_v21 }
 0x161   :  { %v173_v29 = vadd.f32 %v172_v26, %v171_v23  ;;  %v180_v30 = vrot.slane %v179_v27, 2 }
 0x162   :  { %312 = vmatpush.msra.mxu3 %v289_v24 }
 0x163   :  { %v174_v32 = vrot.slane %v173_v29, 1  ;;  %v181_v33 = vadd.f32 %v180_v30, %v179_v27  ;;  %v288_v27 = vld [vmem:[#allocation4 + $0x120] sm:$0xff]  ;;  %v287_v30 = vld [vmem:[#allocation4 + $0x118] sm:$0xff] }
 0x164   :  { %313 = vmatpush.msra.mxu3 %v288_v27 }
 0x165   :  { %v175_v35 = vadd.f32 %v174_v32, %v173_v29  ;;  %v182_v36 = vrot.slane %v181_v33, 1 }
 0x166   :  { %314 = vmatpush.msra.mxu3 %v287_v30 }
 0x167   :  { %v176_v38 = vmul.f32 %v175_v35, %v434_v45  ;;  %v183_v39 = vadd.f32 %v182_v36, %v181_v33  ;;  %v284_v36 = vld [vmem:[#allocation4 + $0x100] sm:$0xff] }
 0x168   :  { %315 = vmatpush.msra.mxu3 %v286_v31 }
 0x169   :  { %v184_v42 = vmul.f32 %v183_v39, %v434_v45  ;;  %v185_v43 = vmul.f32 %v176_v38, %v176_v38 }
 0x16a   :  { %316 = vmatpush.msra.mxu3 %v285_v34 }
 0x16b   :  { %v186_v46 = vsub.f32 %v184_v42, %v185_v43 }
 0x16c   :  { %317 = vmatpush.msra.mxu3 %v284_v36 }
 0x16d   :  { %v187_v48 = vmax.f32 %v186_v46, 0.0 }
 0x16f   :  { %v188_v49 = vadd.f32 1e-05, %v187_v48  ;;  %v245_v48 = vld [vmem:[%s469_s3 + $0x5] sm:$0x1] }
 0x171   :  { %339 = vrsqrt.f32 %v188_v49  ;;  %vm195_vm5 = vweird.f32 %v188_v49 }
 0x177   :  { %v340_v50 = vpop.eup %339 }
 0x178   :  { %v190_v51 = vmul.f32 %v340_v50, %v188_v49  ;;  %vm196_vm4 = vweird.f32 %v340_v50 }
 0x179   :  { %vm197_vm6 = vmor %vm195_vm5, %vm196_vm4 }
 0x17a   :  { %v191_v52 = vmul.f32 %v340_v50, %v190_v51 }
 0x17c   :  { %v192_v53 = vmul.f32 0.5, %v191_v52 }
 0x17e   :  { %v193_v54 = vsub.f32 1.5, %v192_v53 }
 0x180   :  { %v194_v56 = vmul.f32 %v340_v50, %v193_v54 }
 0x182   :  { %v198_v57 = vsel %vm197_vm6, %v340_v50, %v194_v56  ;;  %v334_v56 = vld [vmem:[%s469_s3 + $0x6] ss:$0 sm:$0xff] }
 0x183   :  { %v199_v58 = vmul.f32 %v198_v57, %v168_v55 }
 0x185   :  { %v202_v60 = vperm.slane %v199_v58, 0  ;;  %v200_v61 = vmul.f32 %v199_v58, %v176_v38 }
 0x187   :  { %v201_v62 = vsub.f32 %v169_v59, %v200_v61  ;;  %v203_v63 = vmul.f32 %v202_v60, %v165_v19 }
 0x189   :  { %v204_v0 = vperm.slane %v201_v62, 0 }
 0x18b   :  { %v205_v1 = vadd.f32 %v204_v0, %v203_v63 }
 0x18d   :  { %v206_v2 = vmax.f32 %v205_v1, 0.0 }
 0x18f   :  { %240 = vmatmul.f32.vlgmr.msra.gmra.mxu2 %v206_v2 }
 0x212   :  { %v241_v9 = vpop.f32.mrf.mxu2 }
 0x213   :  { %v246_v10 = vrot.slane %v241_v9, 4  ;;  %v253_v11 = vmul.f32 %v241_v9, %v241_v9 }
 0x215   :  { %v247_v13 = vadd.f32 %v246_v10, %v241_v9  ;;  %v254_v14 = vrot.slane %v253_v11, 4 }
 0x217   :  { %v248_v16 = vrot.slane %v247_v13, 2  ;;  %v255_v17 = vadd.f32 %v254_v14, %v253_v11 }
 0x219   :  { %v249_v19 = vadd.f32 %v248_v16, %v247_v13  ;;  %v256_v20 = vrot.slane %v255_v17, 2 }
 0x21b   :  { %v250_v22 = vrot.slane %v249_v19, 1  ;;  %v257_v23 = vadd.f32 %v256_v20, %v255_v17 }
 0x21d   :  { %v251_v25 = vadd.f32 %v250_v22, %v249_v19  ;;  %v258_v26 = vrot.slane %v257_v23, 1 }
 0x21f   :  { %v252_v28 = vmul.f32 %v251_v25, %v434_v45  ;;  %v259_v29 = vadd.f32 %v258_v26, %v257_v23 }
 0x221   :  { %v260_v32 = vmul.f32 %v259_v29, %v434_v45  ;;  %v261_v33 = vmul.f32 %v252_v28, %v252_v28  ;;  %v244_v45 = vld [vmem:[%s469_s3 + $0x4] sm:$0x1] }
 0x223   :  { %v262_v35 = vsub.f32 %v260_v32, %v261_v33 }
 0x225   :  { %v263_v37 = vmax.f32 %v262_v35, 0.0 }
 0x227   :  { %v264_v38 = vadd.f32 1e-05, %v263_v37 }
 0x229   :  { %341 = vrsqrt.f32 %v264_v38  ;;  %vm271_vm8 = vweird.f32 %v264_v38 }
 0x22f   :  { %v342_v39 = vpop.eup %341 }
 0x230   :  { %v266_v40 = vmul.f32 %v342_v39, %v264_v38  ;;  %vm272_vm7 = vweird.f32 %v342_v39 }
 0x231   :  { %vm273_vm9 = vmor %vm271_vm8, %vm272_vm7 }
 0x232   :  { %v267_v41 = vmul.f32 %v342_v39, %v266_v40 }
 0x234   :  { %v268_v42 = vmul.f32 0.5, %v267_v41 }
 0x236   :  { %v269_v43 = vsub.f32 1.5, %v268_v42 }
 0x238   :  { %v270_v44 = vmul.f32 %v342_v39, %v269_v43 }
 0x23a   :  { %v274_v46 = vsel %vm273_vm9, %v342_v39, %v270_v44 }
 0x23b   :  { %v275_v47 = vmul.f32 %v274_v46, %v244_v45 }
 0x23d   :  { %v278_v49 = vperm.slane %v275_v47, 0  ;;  %v276_v50 = vmul.f32 %v275_v47, %v252_v28 }
 0x23f   :  { %v277_v51 = vsub.f32 %v245_v48, %v276_v50  ;;  %v279_v52 = vmul.f32 %v278_v49, %v241_v9 }
 0x241   :  { %v280_v53 = vperm.slane %v277_v51, 0 }
 0x243   :  { %v281_v54 = vadd.f32 %v280_v53, %v279_v52 }
 0x245   :  { %v282_v55 = vmax.f32 %v281_v54, 0.0 }
 0x247   :  { %318 = vmatmul.f32.vlgmr.msra.gmra.mxu3 %v282_v55 }
 0x2ca   :  { %v319_v57 = vpop.f32.mrf.mxu3 }
 0x2cb   :  { %v320_v58 = vadd.f32 %v334_v56, %v319_v57 }
 0x2cd   :  { %322 = vst [vmem:[%s470_s4] sm:$0xff] %v320_v58 }
 0x2ce   :  { %327 = vsyncpa [#allocation3], 1 }
 0x2cf   :  { %328 = vsyncpa [#allocation5], 1 }

</bundles_post_ra>
